<compile_context>
chip_gen: v7x
topology: tpu7x:2x2x1
jax: 0.10.0
libtpu: 0.0.40
codegen_flags: <defaults>
</compile_context>

<pallas_src>
import functools

import jax
import jax.numpy as jnp
from jax.experimental import pallas as pl
from jax.experimental.pallas import tpu as pltpu

OUT_LANES = 128   # lane-dense output slab width (full lane tile)
BP = 8            # sublane-padded batch rows (full (8,128) output tile)


def _round_up(x, m):
    return -(-x // m) * m


# ---------------------------------------------------------------------------
# Static configuration: dims + row offsets of the packed parameter slab
# ---------------------------------------------------------------------------
def make_config(*, vocab, type_vocab, max_seq, H, M, T):
    assert H <= OUT_LANES and 2 * M <= OUT_LANES and M + T + 1 <= OUT_LANES
    E = vocab + type_vocab                      # combined embedding rows
    VEC_OFF = _round_up(E, 8)                   # 8 "vector" rows (pos/biases/head)
    PWG_OFF = VEC_OFF + 8                       # pooler weight (gamma folded)
    W1_OFF = PWG_OFF + _round_up(H, 8)          # MLP w1
    W2_OFF = W1_OFF + _round_up(H, 8)           # MLP w2
    ROWS = W2_OFF + _round_up(2 * M, 8)
    return dict(vocab=vocab, type_vocab=type_vocab, max_seq=max_seq,
                H=H, M=M, T=T, E=E,
                VEC_OFF=VEC_OFF, PWG_OFF=PWG_OFF, W1_OFF=W1_OFF,
                W2_OFF=W2_OFF, ROWS=ROWS)


# ---------------------------------------------------------------------------
# One-time constant folding + packing into a single lane-dense slab
# ---------------------------------------------------------------------------
def fold_params(p, cfg):
    V, TV = cfg["vocab"], cfg["type_vocab"]
    H, M, T = cfg["H"], cfg["M"], cfg["T"]
    VEC_OFF, PWG_OFF = cfg["VEC_OFF"], cfg["PWG_OFF"]
    W1_OFF, W2_OFF, ROWS = cfg["W1_OFF"], cfg["W2_OFF"], cfg["ROWS"]

    # LayerNorm gamma/beta folded into the pooler weight/bias (f32):
    #   (xn*gamma + beta) @ Wp + bp == xn @ (diag(gamma)@Wp) + (beta@Wp + bp)
    pooler_wg_t = p["ln_gamma"].reshape(H, 1) * p["pooler_w_t"]          # [H, H]
    pooler_bg = p["ln_beta"] @ p["pooler_w_t"] + p["pooler_b"]           # [1, H]

    # Seq-len-1 cross attention (softmax over a single key == 1, q/k inert)
    # plus concat-fc, folded to one weight row + bias:
    #   logit = nlp@(V2@O2@fc_wb) + tab@(V1@O1@fc_wa)
    #           + (bv1@O1+bo1)@fc_wa + (bv2@O2+bo2)@fc_wb + fc_b
    head_w_tab = p["attn1_v_t"] @ p["attn1_o_t"] @ p["fc_wa_t"]          # [T, 1]
    head_w_nlp = p["attn2_v_t"] @ p["attn2_o_t"] @ p["fc_wb_t"]          # [M, 1]
    head_b = (p["fc_b"]
              + (p["attn1_bv"] @ p["attn1_o_t"] + p["attn1_bo"]) @ p["fc_wa_t"]
              + (p["attn2_bv"] @ p["attn2_o_t"] + p["attn2_bo"]) @ p["fc_wb_t"])

    slab = jnp.zeros((ROWS, OUT_LANES), jnp.float32)
    # embedding tables (contiguous so the CLS gather is ONE one-hot matmul)
    slab = slab.at[0:V, :H].set(p["word_emb"])
    slab = slab.at[V:V + TV, :H].set(p["type_emb"])
    # vector rows: pos0 / biases / packed head row
    slab = slab.at[VEC_OFF + 0, :H].set(p["pos_emb"][0])
    slab = slab.at[VEC_OFF + 1, :H].set(pooler_bg[0])
    slab = slab.at[VEC_OFF + 2, :2 * M].set(p["mlp_b1"][0])
    slab = slab.at[VEC_OFF + 3, :M].set(p["mlp_b2"][0])
    slab = slab.at[VEC_OFF + 4, :M].set(head_w_nlp[:, 0])
    slab = slab.at[VEC_OFF + 4, M:M + T].set(head_w_tab[:, 0])
    slab = slab.at[VEC_OFF + 4, M + T].set(head_b[0, 0])
    # weight matrices
    slab = slab.at[PWG_OFF:PWG_OFF + H, :H].set(pooler_wg_t)
    slab = slab.at[W1_OFF:W1_OFF + H, :2 * M].set(p["mlp_w1_t"])
    slab = slab.at[W2_OFF:W2_OFF + 2 * M, :M].set(p["mlp_w2_t"])
    return slab


# ---------------------------------------------------------------------------
# Fused kernel: gather -> LN+pooler -> segment mean -> MLP -> head -> sigmoid
# ---------------------------------------------------------------------------
def make_fused_kernel(cfg, S, B):
    V, TV, E = cfg["vocab"], cfg["type_vocab"], cfg["E"]
    H, M, T = cfg["H"], cfg["M"], cfg["T"]
    VEC_OFF, PWG_OFF = cfg["VEC_OFF"], cfg["PWG_OFF"]
    W1_OFF, W2_OFF = cfg["W1_OFF"], cfg["W2_OFF"]
    CUM_OFF = 2 * S  # meta layout: [word ids (S), type ids (S), cumsum (B+1)]

    def kernel(meta_ref, tab_ref, prm_ref, out_ref):
        f32 = jnp.float32

        # --- CLS embedding gather: one-hot over [word_emb; type_emb] block ---
        vt_iota = jax.lax.broadcasted_iota(jnp.int32, (1, E), 1)
        rows = []
        for s in range(S):
            wid = meta_ref[s]              # word id of chunk s (SMEM scalar)
            tid = meta_ref[S + s]          # token-type id of chunk s
            rows.append(((vt_iota == wid) | (vt_iota == V + tid)).astype(f32))
        onehot = jnp.concatenate(rows, axis=0)                  # [S, E]
        emb_tbl = prm_ref[0:E, :H]                              # [E, H]
        pos0 = prm_ref[VEC_OFF + 0:VEC_OFF + 1, :H]             # [1, H]
        x = jnp.dot(onehot, emb_tbl,
                    preferred_element_type=f32) + pos0          # [S, H]

        # --- embedding LayerNorm + BERT pooler (gamma/beta folded into W) ---
        mu = jnp.mean(x, axis=-1, keepdims=True)
        var = jnp.mean((x - mu) ** 2, axis=-1, keepdims=True)
        xn = (x - mu) * jax.lax.rsqrt(var + 1e-12)
        wpg = prm_ref[PWG_OFF:PWG_OFF + H, :H]
        bpg = prm_ref[VEC_OFF + 1:VEC_OFF + 2, :H]
        pooled = jnp.tanh(
            jnp.dot(xn, wpg, preferred_element_type=f32) + bpg)  # [S, H]

        # --- chunk -> note scatter_mean via cumsum-vs-iota segment matmul ---
        note_iota = jax.lax.broadcasted_iota(jnp.int32, (BP, S), 0)
        chunk_iota = jax.lax.broadcasted_iota(jnp.int32, (BP, S), 1)
        step = jnp.zeros((BP, S), jnp.int32)
        for b in range(1, B):
            step = step + (chunk_iota >= meta_ref[CUM_OFF + b]).astype(jnp.int32)
        assign = (note_iota == step).astype(f32)        # [BP, S]; rows >= B are 0
        counts = jnp.sum(assign, axis=-1, keepdims=True)
        nlp0 = jnp.dot(assign, pooled, preferred_element_type=f32)
        nlp0 = nlp0 / jnp.maximum(counts, 1.0)          # [BP, H]

        # --- MLP (Linear -> ReLU -> Linear -> ReLU; Dropout = identity) ---
        w1 = prm_ref[W1_OFF:W1_OFF + H, :2 * M]
        b1 = prm_ref[VEC_OFF + 2:VEC_OFF + 3, :2 * M]
        h = jnp.maximum(jnp.dot(nlp0, w1, preferred_element_type=f32) + b1, 0.0)
        w2 = prm_ref[W2_OFF:W2_OFF + 2 * M, :M]
        b2 = prm_ref[VEC_OFF + 3:VEC_OFF + 4, :M]
        nlp = jnp.maximum(jnp.dot(h, w2, preferred_element_type=f32) + b2, 0.0)

        # --- folded attention/fc head: VPU multiply + XLU lane reduce (no MXU) ---
        head = prm_ref[VEC_OFF + 4:VEC_OFF + 5, :]      # [1, 128]
        w_nlp = head[:, :M]
        w_tab = head[:, M:M + T]
        b_fc = head[:, M + T:M + T + 1]
        logit = (jnp.sum(nlp * w_nlp, axis=-1, keepdims=True)
                 + jnp.sum(tab_ref[...] * w_tab, axis=-1, keepdims=True)
                 + b_fc)                                 # [BP, 1]

        # Numerically stable sigmoid (no overflowing exp).
        z = jnp.exp(-jnp.abs(logit))
        risk = jnp.where(logit >= 0.0, 1.0 / (1.0 + z), z / (1.0 + z))

        # Full (8,128) tile -> single unmasked vst; wrapper reads [:B, 0].
        out_ref[...] = jnp.broadcast_to(risk, out_ref.shape)

    return kernel


def fused_head(meta, tab_pad, slab, cfg, S, B):
    kernel = make_fused_kernel(cfg, S, B)
    return pl.pallas_call(
        kernel,
        out_shape=jax.ShapeDtypeStruct((BP, OUT_LANES), jnp.float32),
        in_specs=[
            pl.BlockSpec(memory_space=pltpu.MemorySpace.SMEM),   # meta (int32)
            pl.BlockSpec(memory_space=pltpu.MemorySpace.VMEM),   # tabular
            pl.BlockSpec(memory_space=pltpu.MemorySpace.VMEM),   # param slab
        ],
        out_specs=pl.BlockSpec(memory_space=pltpu.MemorySpace.VMEM),
    )(meta, tab_pad, slab)


# ---------------------------------------------------------------------------
# Full forward: only tiny int packing / padding remains outside the kernel
# ---------------------------------------------------------------------------
def acu_multimodal_forward(cfg, slab, input_ids, token_type_ids,
                           attention_mask, tabular_x, chunks):
    del attention_mask  # only consumed by the (external) BERT encoder stack
    S = input_ids.shape[0]          # total number of chunks in the batch
    B = chunks.shape[0]             # number of notes
    assert B <= BP, "single-tile head supports up to 8 notes"

    cum = jnp.concatenate([jnp.zeros((1,), jnp.int32),
                           jnp.cumsum(chunks.astype(jnp.int32))])
    meta = jnp.concatenate([input_ids[:, 0].astype(jnp.int32),
                            token_type_ids[:, 0].astype(jnp.int32),
                            cum])                                  # [2S + B + 1]
    tab_pad = jnp.pad(tabular_x.astype(jnp.float32),
                      ((0, BP - B), (0, 0)))                       # [BP, T]

    out = fused_head(meta, tab_pad, slab, cfg, S, B)               # [BP, 128]
    return out[:B, 0]


# ---------------------------------------------------------------------------
# Deterministic parameter initialization (shapes follow the PyTorch module)
# ---------------------------------------------------------------------------
def init_params(key, *, vocab=64, type_vocab=2, max_seq=8, H=32, M=32, T=16):
    ks = jax.random.split(key, 24)

    def nrm(k, shape, s=0.02):
        return (s * jax.random.normal(k, shape)).astype(jnp.float32)

    p = {}
    # BERT stub (embeddings + pooler; encoder stack is external -> TODO above)
    p["word_emb"] = nrm(ks[0], (vocab, H))
    p["type_emb"] = nrm(ks[1], (type_vocab, H))
    p["pos_emb"] = nrm(ks[2], (max_seq, H))
    p["ln_gamma"] = jnp.ones((1, H), jnp.float32)
    p["ln_beta"] = jnp.zeros((1, H), jnp.float32)
    p["pooler_w_t"] = nrm(ks[3], (H, H))
    p["pooler_b"] = jnp.zeros((1, H), jnp.float32)
    # MLP: Linear(H, 2M) -> Dropout -> ReLU -> Linear(2M, M) -> Dropout -> ReLU
    p["mlp_w1_t"] = nrm(ks[4], (H, 2 * M))
    p["mlp_b1"] = nrm(ks[5], (1, 2 * M))
    p["mlp_w2_t"] = nrm(ks[6], (2 * M, M))
    p["mlp_b2"] = nrm(ks[7], (1, M))
    # trans_nlp_with_tab: MultiheadAttention(embed=M, kdim=vdim=T, heads=4)
    p["attn1_q_t"] = nrm(ks[8], (M, M))   # inert for seq-len-1 cross-attn
    p["attn1_k_t"] = nrm(ks[9], (T, M))   # inert for seq-len-1 cross-attn
    p["attn1_v_t"] = nrm(ks[10], (T, M))
    p["attn1_bv"] = nrm(ks[11], (1, M))
    p["attn1_o_t"] = nrm(ks[12], (M, M))
    p["attn1_bo"] = nrm(ks[13], (1, M))
    # trans_tab_with_nlp: MultiheadAttention(embed=T, kdim=vdim=M, heads=1)
    p["attn2_q_t"] = nrm(ks[14], (T, T))  # inert
    p["attn2_k_t"] = nrm(ks[15], (M, T))  # inert
    p["attn2_v_t"] = nrm(ks[16], (M, T))
    p["attn2_bv"] = nrm(ks[17], (1, T))
    p["attn2_o_t"] = nrm(ks[18], (T, T))
    p["attn2_bo"] = nrm(ks[19], (1, T))
    # fc: Linear(M + T, 1), split into the two concat halves
    p["fc_wa_t"] = nrm(ks[20], (M, 1))
    p["fc_wb_t"] = nrm(ks[21], (T, 1))
    p["fc_b"] = nrm(ks[22], (1, 1))
    return p


if __name__ == "__main__":
    key = jax.random.PRNGKey(0)
    kp, k_ids, k_tab = jax.random.split(key, 3)

    B, seq, vocab = 2, 8, 64
    H, M, T = 32, 32, 16                         # bert_hidden, intermediate_mlp, tabular
    chunks = jnp.array([2, 1], dtype=jnp.int32)  # note 0 -> 2 chunks, note 1 -> 1 chunk
    sum_chunks = 3

    cfg = make_config(vocab=vocab, type_vocab=2, max_seq=seq, H=H, M=M, T=T)
    params = init_params(kp, vocab=vocab, max_seq=seq, H=H, M=M, T=T)
    slab = fold_params(params, cfg)              # one-time fold + pack (f32)

    input_ids = jax.random.randint(k_ids, (sum_chunks, seq), 0, vocab, dtype=jnp.int32)
    token_type_ids = jnp.zeros((sum_chunks, seq), jnp.int32)
    attention_mask = jnp.ones((sum_chunks, seq), jnp.float32)
    tabular_x = jax.random.normal(k_tab, (B, T), dtype=jnp.float32)

    fwd = jax.jit(functools.partial(acu_multimodal_forward, cfg))
    risk = fwd(slab, input_ids, token_type_ids, attention_mask, tabular_x, chunks)
    risk = jax.block_until_ready(risk)

    assert risk.shape == (B,)
    assert bool(jnp.all(jnp.isfinite(risk)))
    assert bool(jnp.all((risk >= 0.0) & (risk <= 1.0)))
    print("KERNEL_OK")
</pallas_src>

<mosaic_0001>
module attributes {stable_mosaic.version = 11 : i64} {
  func.func @kernel(%arg0: memref<9xi32, #tpu.memory_space<smem>>, %arg1: memref<8x16xf32, #tpu.memory_space<vmem>>, %arg2: memref<208x128xf32, #tpu.memory_space<vmem>>, %arg3: memref<8x128xf32, #tpu.memory_space<vmem>>) attributes {dimension_semantics = [], scalar_prefetch = 0 : i64, scratch_operands = 0 : i64, tpu.core_type = #tpu.core_type<tc>} {
    %0 = tpu.iota {dimensions = array<i32: 1>} : vector<1x66xi32>
    %c0 = arith.constant 0 : index
    %1 = memref.load %arg0[%c0] : memref<9xi32, #tpu.memory_space<smem>>
    %c3 = arith.constant 3 : index
    %2 = memref.load %arg0[%c3] : memref<9xi32, #tpu.memory_space<smem>>
    %3 = vector.broadcast %1 : i32 to vector<1x66xi32>
    %4 = arith.cmpi eq, %0, %3 : vector<1x66xi32>
    %c64_i32 = arith.constant 64 : i32
    %5 = arith.addi %c64_i32, %2 : i32
    %6 = vector.broadcast %5 : i32 to vector<1x66xi32>
    %7 = arith.cmpi eq, %0, %6 : vector<1x66xi32>
    %8 = arith.ori %4, %7 : vector<1x66xi1>
    %9 = arith.extui %8 : vector<1x66xi1> to vector<1x66xi32>
    %10 = arith.sitofp %9 : vector<1x66xi32> to vector<1x66xf32>
    %c1 = arith.constant 1 : index
    %11 = memref.load %arg0[%c1] : memref<9xi32, #tpu.memory_space<smem>>
    %c4 = arith.constant 4 : index
    %12 = memref.load %arg0[%c4] : memref<9xi32, #tpu.memory_space<smem>>
    %13 = vector.broadcast %11 : i32 to vector<1x66xi32>
    %14 = arith.cmpi eq, %0, %13 : vector<1x66xi32>
    %c64_i32_0 = arith.constant 64 : i32
    %15 = arith.addi %c64_i32_0, %12 : i32
    %16 = vector.broadcast %15 : i32 to vector<1x66xi32>
    %17 = arith.cmpi eq, %0, %16 : vector<1x66xi32>
    %18 = arith.ori %14, %17 : vector<1x66xi1>
    %19 = arith.extui %18 : vector<1x66xi1> to vector<1x66xi32>
    %20 = arith.sitofp %19 : vector<1x66xi32> to vector<1x66xf32>
    %c2 = arith.constant 2 : index
    %21 = memref.load %arg0[%c2] : memref<9xi32, #tpu.memory_space<smem>>
    %c5 = arith.constant 5 : index
    %22 = memref.load %arg0[%c5] : memref<9xi32, #tpu.memory_space<smem>>
    %23 = vector.broadcast %21 : i32 to vector<1x66xi32>
    %24 = arith.cmpi eq, %0, %23 : vector<1x66xi32>
    %c64_i32_1 = arith.constant 64 : i32
    %25 = arith.addi %c64_i32_1, %22 : i32
    %26 = vector.broadcast %25 : i32 to vector<1x66xi32>
    %27 = arith.cmpi eq, %0, %26 : vector<1x66xi32>
    %28 = arith.ori %24, %27 : vector<1x66xi1>
    %29 = arith.extui %28 : vector<1x66xi1> to vector<1x66xi32>
    %30 = arith.sitofp %29 : vector<1x66xi32> to vector<1x66xf32>
    %31 = tpu.concatenate %10, %20, %30 in 0 : vector<1x66xf32>, vector<1x66xf32>, vector<1x66xf32> -> vector<3x66xf32>
    %c0_2 = arith.constant 0 : index
    %c0_3 = arith.constant 0 : index
    %32 = vector.load %arg2[%c0_2, %c0_3] : memref<208x128xf32, #tpu.memory_space<vmem>>, vector<66x32xf32>
    %c72 = arith.constant 72 : index
    %c0_4 = arith.constant 0 : index
    %33 = vector.load %arg2[%c72, %c0_4] : memref<208x128xf32, #tpu.memory_space<vmem>>, vector<1x32xf32>
    %cst = arith.constant dense<0.000000e+00> : vector<3x32xf32>
    %34 = tpu.matmul %31, %32, %cst {dimension_numbers = #tpu.dot_dimension_numbers<[1], [0], [0], [1], [0, 0, 1, 1], [], []>} : vector<3x66xf32>, vector<66x32xf32>, vector<3x32xf32> -> vector<3x32xf32>
    %35 = vector.broadcast %33 : vector<1x32xf32> to vector<3x32xf32>
    %36 = arith.addf %34, %35 : vector<3x32xf32>
    %cst_5 = arith.constant dense<0.000000e+00> : vector<3xf32>
    %37 = vector.multi_reduction <add>, %36, %cst_5 [1] : vector<3x32xf32> to vector<3xf32>
    %38 = vector.shape_cast %37 : vector<3xf32> to vector<3x1xf32>
    %cst_6 = arith.constant 3.200000e+01 : f32
    %39 = vector.broadcast %cst_6 : f32 to vector<3x1xf32>
    %40 = arith.divf %38, %39 : vector<3x1xf32>
    %41 = vector.broadcast %40 : vector<3x1xf32> to vector<3x32xf32>
    %42 = arith.subf %36, %41 : vector<3x32xf32>
    %43 = arith.mulf %42, %42 : vector<3x32xf32>
    %cst_7 = arith.constant dense<0.000000e+00> : vector<3xf32>
    %44 = vector.multi_reduction <add>, %43, %cst_7 [1] : vector<3x32xf32> to vector<3xf32>
    %45 = vector.shape_cast %44 : vector<3xf32> to vector<3x1xf32>
    %cst_8 = arith.constant 3.200000e+01 : f32
    %46 = vector.broadcast %cst_8 : f32 to vector<3x1xf32>
    %47 = arith.divf %45, %46 : vector<3x1xf32>
    %48 = vector.broadcast %40 : vector<3x1xf32> to vector<3x32xf32>
    %49 = arith.subf %36, %48 : vector<3x32xf32>
    %cst_9 = arith.constant 9.99999996E-13 : f32
    %50 = vector.broadcast %cst_9 : f32 to vector<3x1xf32>
    %51 = arith.addf %47, %50 : vector<3x1xf32>
    %52 = math.rsqrt %51 : vector<3x1xf32>
    %53 = vector.broadcast %52 : vector<3x1xf32> to vector<3x32xf32>
    %54 = arith.mulf %49, %53 : vector<3x32xf32>
    %c80 = arith.constant 80 : index
    %c0_10 = arith.constant 0 : index
    %55 = vector.load %arg2[%c80, %c0_10] : memref<208x128xf32, #tpu.memory_space<vmem>>, vector<32x32xf32>
    %c73 = arith.constant 73 : index
    %c0_11 = arith.constant 0 : index
    %56 = vector.load %arg2[%c73, %c0_11] : memref<208x128xf32, #tpu.memory_space<vmem>>, vector<1x32xf32>
    %cst_12 = arith.constant dense<0.000000e+00> : vector<3x32xf32>
    %57 = tpu.matmul %54, %55, %cst_12 {dimension_numbers = #tpu.dot_dimension_numbers<[1], [0], [0], [1], [0, 0, 1, 1], [], []>} : vector<3x32xf32>, vector<32x32xf32>, vector<3x32xf32> -> vector<3x32xf32>
    %58 = vector.broadcast %56 : vector<1x32xf32> to vector<3x32xf32>
    %59 = arith.addf %57, %58 : vector<3x32xf32>
    %60 = math.tanh %59 : vector<3x32xf32>
    %61 = tpu.iota {dimensions = array<i32: 0>} : vector<8x3xi32>
    %62 = tpu.iota {dimensions = array<i32: 1>} : vector<8x3xi32>
    %c0_i32 = arith.constant 0 : i32
    %63 = vector.broadcast %c0_i32 : i32 to vector<8x3xi32>
    %c7 = arith.constant 7 : index
    %64 = memref.load %arg0[%c7] : memref<9xi32, #tpu.memory_space<smem>>
    %65 = vector.broadcast %64 : i32 to vector<8x3xi32>
    %66 = arith.cmpi sge, %62, %65 : vector<8x3xi32>
    %67 = arith.extui %66 : vector<8x3xi1> to vector<8x3xi32>
    %68 = arith.addi %63, %67 : vector<8x3xi32>
    %69 = arith.cmpi eq, %61, %68 : vector<8x3xi32>
    %70 = arith.extui %69 : vector<8x3xi1> to vector<8x3xi32>
    %71 = arith.sitofp %70 : vector<8x3xi32> to vector<8x3xf32>
    %cst_13 = arith.constant dense<0.000000e+00> : vector<8xf32>
    %72 = vector.multi_reduction <add>, %71, %cst_13 [1] : vector<8x3xf32> to vector<8xf32>
    %73 = vector.shape_cast %72 : vector<8xf32> to vector<8x1xf32>
    %cst_14 = arith.constant dense<0.000000e+00> : vector<8x32xf32>
    %74 = tpu.matmul %71, %60, %cst_14 {dimension_numbers = #tpu.dot_dimension_numbers<[1], [0], [0], [1], [0, 0, 1, 1], [], []>} : vector<8x3xf32>, vector<3x32xf32>, vector<8x32xf32> -> vector<8x32xf32>
    %cst_15 = arith.constant 1.000000e+00 : f32
    %75 = vector.broadcast %cst_15 : f32 to vector<8x1xf32>
    %76 = arith.maximumf %73, %75 : vector<8x1xf32>
    %77 = vector.broadcast %76 : vector<8x1xf32> to vector<8x32xf32>
    %78 = arith.divf %74, %77 : vector<8x32xf32>
    %c112 = arith.constant 112 : index
    %c0_16 = arith.constant 0 : index
    %79 = vector.load %arg2[%c112, %c0_16] : memref<208x128xf32, #tpu.memory_space<vmem>>, vector<32x64xf32>
    %c74 = arith.constant 74 : index
    %c0_17 = arith.constant 0 : index
    %80 = vector.load %arg2[%c74, %c0_17] : memref<208x128xf32, #tpu.memory_space<vmem>>, vector<1x64xf32>
    %cst_18 = arith.constant dense<0.000000e+00> : vector<8x64xf32>
    %81 = tpu.matmul %78, %79, %cst_18 {dimension_numbers = #tpu.dot_dimension_numbers<[1], [0], [0], [1], [0, 0, 1, 1], [], []>} : vector<8x32xf32>, vector<32x64xf32>, vector<8x64xf32> -> vector<8x64xf32>
    %82 = vector.broadcast %80 : vector<1x64xf32> to vector<8x64xf32>
    %83 = arith.addf %81, %82 : vector<8x64xf32>
    %cst_19 = arith.constant 0.000000e+00 : f32
    %84 = vector.broadcast %cst_19 : f32 to vector<8x64xf32>
    %85 = arith.maximumf %83, %84 : vector<8x64xf32>
    %c144 = arith.constant 144 : index
    %c0_20 = arith.constant 0 : index
    %86 = vector.load %arg2[%c144, %c0_20] : memref<208x128xf32, #tpu.memory_space<vmem>>, vector<64x32xf32>
    %c75 = arith.constant 75 : index
    %c0_21 = arith.constant 0 : index
    %87 = vector.load %arg2[%c75, %c0_21] : memref<208x128xf32, #tpu.memory_space<vmem>>, vector<1x32xf32>
    %cst_22 = arith.constant dense<0.000000e+00> : vector<8x32xf32>
    %88 = tpu.matmul %85, %86, %cst_22 {dimension_numbers = #tpu.dot_dimension_numbers<[1], [0], [0], [1], [0, 0, 1, 1], [], []>} : vector<8x64xf32>, vector<64x32xf32>, vector<8x32xf32> -> vector<8x32xf32>
    %89 = vector.broadcast %87 : vector<1x32xf32> to vector<8x32xf32>
    %90 = arith.addf %88, %89 : vector<8x32xf32>
    %cst_23 = arith.constant 0.000000e+00 : f32
    %91 = vector.broadcast %cst_23 : f32 to vector<8x32xf32>
    %92 = arith.maximumf %90, %91 : vector<8x32xf32>
    %c76 = arith.constant 76 : index
    %c0_24 = arith.constant 0 : index
    %93 = vector.load %arg2[%c76, %c0_24] : memref<208x128xf32, #tpu.memory_space<vmem>>, vector<1x128xf32>
    %94 = vector.extract_strided_slice %93 {offsets = [0, 0], sizes = [1, 32], strides = [1, 1]} : vector<1x128xf32> to vector<1x32xf32>
    %95 = vector.extract_strided_slice %93 {offsets = [0, 32], sizes = [1, 16], strides = [1, 1]} : vector<1x128xf32> to vector<1x16xf32>
    %96 = vector.extract_strided_slice %93 {offsets = [0, 48], sizes = [1, 1], strides = [1, 1]} : vector<1x128xf32> to vector<1x1xf32>
    %97 = vector.broadcast %94 : vector<1x32xf32> to vector<8x32xf32>
    %98 = arith.mulf %92, %97 : vector<8x32xf32>
    %cst_25 = arith.constant dense<0.000000e+00> : vector<8xf32>
    %99 = vector.multi_reduction <add>, %98, %cst_25 [1] : vector<8x32xf32> to vector<8xf32>
    %100 = vector.shape_cast %99 : vector<8xf32> to vector<8x1xf32>
    %c0_26 = arith.constant 0 : index
    %c0_27 = arith.constant 0 : index
    %101 = vector.load %arg1[%c0_26, %c0_27] : memref<8x16xf32, #tpu.memory_space<vmem>>, vector<8x16xf32>
    %102 = vector.broadcast %95 : vector<1x16xf32> to vector<8x16xf32>
    %103 = arith.mulf %101, %102 : vector<8x16xf32>
    %cst_28 = arith.constant dense<0.000000e+00> : vector<8xf32>
    %104 = vector.multi_reduction <add>, %103, %cst_28 [1] : vector<8x16xf32> to vector<8xf32>
    %105 = vector.shape_cast %104 : vector<8xf32> to vector<8x1xf32>
    %106 = arith.addf %100, %105 : vector<8x1xf32>
    %107 = vector.broadcast %96 : vector<1x1xf32> to vector<8x1xf32>
    %108 = arith.addf %106, %107 : vector<8x1xf32>
    %109 = math.absf %108 : vector<8x1xf32>
    %cst_29 = arith.constant 0.000000e+00 : f32
    %110 = vector.broadcast %cst_29 : f32 to vector<8x1xf32>
    %111 = arith.subf %110, %109 : vector<8x1xf32>
    %112 = math.exp %111 : vector<8x1xf32>
    %cst_30 = arith.constant 0.000000e+00 : f32
    %113 = vector.broadcast %cst_30 : f32 to vector<8x1xf32>
    %114 = arith.cmpf oge, %108, %113 : vector<8x1xf32>
    %cst_31 = arith.constant 1.000000e+00 : f32
    %115 = vector.broadcast %cst_31 : f32 to vector<8x1xf32>
    %116 = arith.addf %115, %112 : vector<8x1xf32>
    %cst_32 = arith.constant 1.000000e+00 : f32
    %117 = vector.broadcast %cst_32 : f32 to vector<8x1xf32>
    %118 = arith.divf %117, %116 : vector<8x1xf32>
    %cst_33 = arith.constant 1.000000e+00 : f32
    %119 = vector.broadcast %cst_33 : f32 to vector<8x1xf32>
    %120 = arith.addf %119, %112 : vector<8x1xf32>
    %121 = arith.divf %112, %120 : vector<8x1xf32>
    %122 = arith.select %114, %118, %121 : vector<8x1xi1>, vector<8x1xf32>
    %123 = vector.shape_cast %122 : vector<8x1xf32> to vector<8x1xf32>
    %124 = vector.broadcast %123 : vector<8x1xf32> to vector<8x128xf32>
    %c0_34 = arith.constant 0 : index
    %c0_35 = arith.constant 0 : index
    %125 = vector.load %arg3[%c0_34, %c0_35] : memref<8x128xf32, #tpu.memory_space<vmem>>, vector<8x128xf32>
    tpu.vector_store %arg3[%c0_34, %c0_35], %124 {strides = array<i32>} : memref<8x128xf32, #tpu.memory_space<vmem>>, vector<8x128xf32>,
    return
  }
}

</mosaic_0001>

<bundles_post_ra>
// kernel: acu_multimodal_forward.1
= control target key start
LH: loop header
LB: loop body
LE: loop exit
PB: predicated region body
PF: predicated region fallthrough
CT: control target
= control target key end

     0   :  { %8 = vsyncpa [#allocation4], 0  ;;  %s888_s0 = inlined_call_operand.vmem [shape: s32[9], index: 0, kind: input, shape index: {}]   ;;  %s889_s1 = inlined_call_operand.vmem [shape: f32[8,16], index: 1, kind: input, shape index: {}]   ;;  %s890_s2 = inlined_call_operand.hbm [shape: f32[208,128], index: 2, kind: input, shape index: {}]   ;;  %s891_s3 = inlined_call_operand.vmem [shape: f32[8,128], index: 3, kind: output, shape index: {}]  }
   0x1   :  { %s16_s14 = sshll.u32 %s888_s0, 4  ;;  %s17_s14 = int_to_ptr.vmem [resolvable:$true] %s16_s14 }
   0x2   :  { %9 = vsyncpa [#allocation3], 0  ;;  %s751_s15 = scalar_lea.vmem %s17_s14, 16  ;;  %p756_p1 = scmp.lt.s32.totalorder %s17_s14, %s17_s14 }
   0x3   :  { %p752_p0 = scmp.ne.s32.totalorder %s17_s14, %s751_s15  ;;  %p757_p2 = scmp.lt.s32.totalorder %s751_s15, %s751_s15 }
   0x5   :  { %p758_p3 = por %p757_p2, %p756_p1 }
   0x7   :  { %p759_p4 = pnand %p758_p3, %p752_p0 }
   0x9   :  { %762 = shalt.err (!%p759_p4)
}
   0xa   :  { %s789_s16 = smov [#allocation2]   ;;  %s790_s17 = smov [#allocation5]  }
   0xb   :  { %19 = dma.vmem_to_smem %s17_s14, 16, %s789_s16, [#allocation4]  }
   0xc   :  { %s27_s18 = sshll.u32 %s790_s17, 4  ;;  %s763_s21 = scalar_lea.hbm %s890_s2, 3328  ;;  %s28_s18 = int_to_ptr.vmem [resolvable:$true] %s27_s18 }
   0xd   :  { %p764_p5 = scmp.ne.s32.totalorder %s890_s2, %s763_s21  ;;  %p767_p6 = scmp.lt.u32.totalorder %s763_s21, %s890_s2 }
   0xf   :  { %p769_p7 = pnand %p767_p6, %p764_p5 }
  0x11   :  { %772 = shalt.err (!%p769_p7)
}
  0x12   :  { %s773_s25 = scalar_lea.vmem %s28_s18, 3328  ;;  %p778_p9 = scmp.lt.s32.totalorder %s28_s18, %s28_s18 }
  0x13   :  { %p774_p8 = scmp.ne.s32.totalorder %s28_s18, %s773_s25  ;;  %p779_p10 = scmp.lt.s32.totalorder %s773_s25, %s773_s25 }
  0x15   :  { %p780_p11 = por %p779_p10, %p778_p9 }
  0x17   :  { %p781_p12 = pnand %p780_p11, %p774_p8 }
  0x19   :  { %784 = shalt.err (!%p781_p12)
}
  0x1a   :  { %s791_s26 = smov 128   ;;  %s792_s27 = smov 8  }
  0x1b   :  { %33 = dma.hbm_to_vmem [thread:$0]  %s890_s2, 3328, %s28_s18, [#allocation3], %s791_s26, %s791_s26, %s792_s27  }
  0x1c   :  { %785 = dma.done.wait [#allocation4], 16  }
  0x1d   :  { %786 = vsyncadd [#allocation4], 4294967280 }
  0x1e   :  { %787 = dma.done.wait [#allocation3], 3328  }
  0x1f   :  { %788 = vsyncadd [#allocation3], 4294963968 }
  0x20   :  { %40 = sfence }
  0x21   :  { %v77_v0 = vld [vmem:[#allocation5] sm:$0xff]  ;;  %v78_v1 = vld [vmem:[#allocation5 + $0x8] sm:$0xff]  ;;  %v79_v2 = vld [vmem:[#allocation5 + $0x10] sm:$0xff]  ;;  %v793_v3 = vmov 0.0|0.0   ;;  %v41_v6 = vlaneseq  ;;  %s43_s30 = sld [smem:[#allocation2]]  ;;  %vm794_vm0 = vmmov 0  }
  0x22   :  { %694 = vmatprep.subr.bf16.mxu0 %v793_v3  ;;  %v695_v4 = vpack.c.bf16 %v78_v1, %v77_v0  ;;  %v80_v5 = vld [vmem:[#allocation5 + $0x18] sm:$0xff]  ;;  %706 = vmatprep.subr.bf16.mxu1 %v793_v3  ;;  %v795_v7 = vmov 0.0   ;;  %s574_s2 = sld [smem:[#allocation2 + $0x3]]  ;;  %s576_s4 = sld [smem:[#allocation2 + $0x1]]  ;;  %v81_v9 = vld [vmem:[#allocation5 + $0x20] sm:$0xff]  ;;  %v82_v10 = vld [vmem:[#allocation5 + $0x28] sm:$0xff] }
  0x23   :  { %645 = vmatprep.mubr.msk.f32.mxu0 %vm794_vm0, %v795_v7  ;;  %656 = vmatprep.mubr.msk.f32.mxu1 %vm794_vm0, %v795_v7  ;;  %v698_v8 = vpack.c.bf16 %v80_v5, %v79_v2  ;;  %s577_s5 = sld [smem:[#allocation2 + $0x4]]  ;;  %s579_s6 = sld [smem:[#allocation2 + $0x2]]  ;;  %v842_v11 = vand.u32 127, %v41_v6  ;;  %v701_v12 = vpack.c.bf16 %v82_v10, %v81_v9  ;;  %v83_v14 = vld [vmem:[#allocation5 + $0x30] sm:$0xff]  ;;  %v84_v15 = vld [vmem:[#allocation5 + $0x38] sm:$0xff]  ;;  %vm73_vm7 = vcmask 1040384  }
  0x24   :  { %696 = vmatpush3.bf16.msra.mxu0 %v695_v4  ;;  %s580_s7 = sld [smem:[#allocation2 + $0x5]]  ;;  %v704_v20 = vpack.c.bf16 %v84_v15, %v83_v14  ;;  %vm75_vm10 = vcmask 1041408   ;;  %v85_v27 = vld [vmem:[#allocation5 + $0x40] sm:$0x3]  ;;  %vm91_vm12 = vcmask 539648   ;;  %vm168_vm13 = vcmask 256000  }
  0x25   :  { %697 = vmatprep.subr.bf16.mxu0 %v793_v3  ;;  %v582_v29 = vld [vmem:[#allocation5 + $0x48] ss:$0 sm:$0xff]  ;;  %v183_v39 = vld [vmem:[#allocation5 + $0x50] sm:$0xff]  ;;  %v184_v40 = vld [vmem:[#allocation5 + $0x58] sm:$0xff]  ;;  %vm192_vm14 = vcmask 261120   ;;  %s587_s11 = sld [smem:[#allocation2 + $0x7]] }
  0x26   :  { %v185_v41 = vld [vmem:[#allocation5 + $0x60] sm:$0xff]  ;;  %v707_v42 = vpack.c.bf16 %v184_v40, %v183_v39  ;;  %v186_v43 = vld [vmem:[#allocation5 + $0x68] sm:$0xff]  ;;  %v268_v51 = vshrl.u32 %v41_v6, 7  ;;  %v796_v52 = vmov 0   ;;  %v360_v60 = vld [vmem:[#allocation5 + $0x70] sm:$0xff]  ;;  %s797_s12 = smov 96  }
  0x27   :  { %v45_v13 = vstv %s43_s30  ;;  %v710_v44 = vpack.c.bf16 %v186_v43, %v185_v41  ;;  %v585_v56 = vld [vmem:[#allocation5 + $0x49] ss:$0 sm:$0xff]  ;;  %v361_v61 = vld [vmem:[#allocation5 + $0x78] sm:$0xff]  ;;  %v362_v0 = vld [vmem:[#allocation5 + $0x80] sm:$0xff] }
  0x28   :  { %699 = vmatpush3.bf16.msra.mxu0 %v698_v8  ;;  %vm46_vm1 = vcmp.eq.s32.totalorder %v842_v11, %v45_v13  ;;  %s47_s8 = sadd.s32 64, %s574_s2  ;;  %v55_v16 = vstv %s576_s4  ;;  %708 = vmatpush3.bf16.msra.mxu1 %v707_v42  ;;  %v713_v62 = vpack.c.bf16 %v361_v61, %v360_v60  ;;  %v363_v1 = vld [vmem:[#allocation5 + $0x88] sm:$0xff]  ;;  %v443_v4 = vld [vmem:[#allocation5 + $0x90] sm:$0xff]  ;;  %v444_v5 = vld [vmem:[#allocation5 + $0x98] sm:$0xff] }
  0x29   :  { %700 = vmatprep.subr.bf16.mxu0 %v793_v3  ;;  %v48_v17 = vstv %s47_s8  ;;  %vm847_vm2 = vcmp.eq.s32.totalorder %v842_v11, %v55_v16  ;;  %s57_s9 = sadd.s32 64, %s577_s5  ;;  %v65_v19 = vstv %s579_s6  ;;  %709 = vmatprep.subr.bf16.mxu1 %v793_v3  ;;  %v716_v2 = vpack.c.bf16 %v363_v1, %v362_v0  ;;  %v445_v6 = vld [vmem:[#allocation5 + $0xa0] sm:$0xff]  ;;  %v446_v9 = vld [vmem:[#allocation5 + $0xa8] sm:$0xff] }
  0x2a   :  { %vm49_vm3 = vcmp.eq.s32.totalorder %v842_v11, %v48_v17  ;;  %v58_v21 = vstv %s57_s9  ;;  %vm66_vm4 = vcmp.eq.s32.totalorder %v842_v11, %v65_v19  ;;  %s67_s10 = sadd.s32 64, %s580_s7  ;;  %v719_v8 = vpack.c.bf16 %v444_v5, %v443_v4  ;;  %v449_v19 = vld [vmem:[#allocation5 + $0xc0] sm:$0xff] }
  0x2b   :  { %vm50_vm5 = vmor %vm46_vm1, %vm49_vm3  ;;  %vm59_vm6 = vcmp.eq.s32.totalorder %v842_v11, %v58_v21  ;;  %v68_v22 = vstv %s67_s10  ;;  %v270_v50 = vstv %s587_s11  ;;  %vm283_vm3 = vcmask 1042432  }
  0x2c   :  { %702 = vmatpush3.bf16.msra.mxu0 %v701_v12  ;;  %v575_v23 = vsel %vm50_vm5, 1.0, %v795_v7  ;;  %vm60_vm8 = vmor %vm847_vm2, %vm59_vm6  ;;  %vm69_vm9 = vcmp.eq.s32.totalorder %v842_v11, %v68_v22  ;;  %711 = vmatpush3.bf16.msra.mxu1 %v710_v44  ;;  %vm271_vm15 = vcmp.ge.s32.totalorder %v842_v11, %v270_v50  ;;  %vm276_vm2 = vcmask 23552   ;;  %v447_v11 = vld [vmem:[#allocation5 + $0xb0] sm:$0xff]  ;;  %v448_v12 = vld [vmem:[#allocation5 + $0xb8] sm:$0xff] }
  0x2d   :  { %703 = vmatprep.subr.bf16.mxu0 %v793_v3  ;;  %v578_v24 = vsel %vm60_vm8, 1.0, %v795_v7  ;;  %vm70_vm11 = vmor %vm66_vm4, %vm69_vm9  ;;  %659 = vmatprep.subr.mxu1 %v795_v7  ;;  %v272_v53 = vsel %vm271_vm15, 1, %v796_v52  ;;  %v722_v10 = vpack.c.bf16 %v446_v9, %v445_v6  ;;  %v725_v13 = vpack.c.bf16 %v448_v12, %v447_v11  ;;  %v595_v22 = vld [vmem:[#allocation5 + $0x4c] ss:$0 sm:$0xff] }
  0x2e   :  { %v581_v25 = vsel %vm70_vm11, 1.0, %v795_v7  ;;  %v74_v26 = vsel %vm73_vm7, %v575_v23, %v578_v24  ;;  %vm273_vm1 = vcmp.eq.s32.totalorder %v268_v51, %v272_v53  ;;  %v591_v23 = vld [vmem:[#allocation5 + $0x4a] ss:$0 sm:$0xff]  ;;  %vm546_vm4 = vcmask 130048  }
  0x2f   :  { %v76_v28 = vsel %vm75_vm10, %v74_v26, %v581_v25  ;;  %v588_v54 = vsel %vm273_vm1, 1.0, %v795_v7 }
  0x30   :  { %705 = vmatpush3.bf16.msra.mxu0 %v704_v20  ;;  %v277_v55 = vsel %vm276_vm2, %v588_v54, 0.0  ;;  %v450_v20 = vld [vmem:[#allocation5 + $0xc8] sm:$0xff] }
  0x31   :  { %643 = vmatprep.subr.mxu0 %v795_v7  ;;  %278 = vadd.xlane.f32.xlu1 %v277_v55  ;;  %v728_v21 = vpack.c.bf16 %v450_v20, %v449_v19 }
  0x34   :  { %644 = vmatpush3.msk.msra.mxu0 %vm75_vm10, %v85_v27  ;;  %v593_v27 = vld [vmem:[#allocation5 + $0x4b] ss:$0 sm:$0xff] }
  0x35   :  { %646 = vmatmul.mubr.msk.f32.vlgmr.msra.gmra.mrb[0].mxu0 %vm91_vm12, %v76_v28  ;;  %718 = vmatprep.subr.bf16.mxu0 %v793_v3 }
  0x36   :  { %691 = vmatprep.mubr.msk.f32.mxu0 %vm794_vm0, %v795_v7  ;;  %720 = vmatpush3.bf16.msra.mxu0 %v719_v8 }
  0x37   :  { %721 = vmatprep.subr.bf16.mxu0 %v793_v3 }
  0x3a   :  { %723 = vmatpush3.bf16.msra.mxu0 %v722_v10 }
  0x3b   :  { %724 = vmatprep.subr.bf16.mxu0 %v793_v3 }
  0x3e   :  { %726 = vmatpush3.bf16.msra.mxu0 %v725_v13 }
  0x3f   :  { %727 = vmatprep.subr.bf16.mxu0 %v793_v3 }
  0x42   :  { %729 = vmatpush3.bf16.msra.mxu0 %v728_v21  ;;  %542 = vrot.lane.b32.xlu1 %v595_v22, %s797_s12 }
 0x108   :  { %v164_v30 = vpop.f32.mrb[0].mxu0 }
 0x109   :  { %v165_v31 = vadd.f32 %v582_v29, %v164_v30  ;;  %v647_v32 = vpop.f32.mrb[1].mxu0 }
 0x10b   :  { %v169_v33 = vsel %vm168_vm13, %v165_v31, 0.0 }
 0x10c   :  { %170 = vadd.xlane.f32.xlu0 %v169_v33 }
 0x199   :  { %v171_v34 = vpop.xlane.xlu0 %170 }
 0x19a   :  { %v173_v35 = vmul.f32 0.03125, %v171_v34 }
 0x19c   :  { %v174_v36 = vsub.f32 %v165_v31, %v173_v35  ;;  %v540_v31 = vld [vmem:[%s889_s1] sm:$0xff] }
 0x19e   :  { %v175_v37 = vmul.f32 %v174_v36, %v174_v36 }
 0x1a0   :  { %v176_v38 = vsel %vm168_vm13, %v175_v37, 0.0 }
 0x1a1   :  { %177 = vadd.xlane.f32.xlu0 %v176_v38  ;;  %v798_v38 = vmov 48  }
 0x1a2   :  { %740 = vset.pattern.permute.xlu0 %v798_v38 }
 0x22e   :  { %v178_v45 = vpop.xlane.xlu0 %177 }
 0x22f   :  { %v179_v46 = vmul.f32 0.03125, %v178_v45 }
 0x231   :  { %v180_v47 = vadd.f32 1e-12, %v179_v46 }
 0x233   :  { %741 = vrsqrt.f32 %v180_v47 }
 0x23d   :  { %v742_v48 = vpop.eup %741 }
 0x23e   :  { %v182_v49 = vmul.f32 %v742_v48, %v174_v36 }
 0x240   :  { %657 = vmatmul.mubr.msk.f32.vlgmr.msra.gmra.mrb[0].mxu1 %vm192_vm14, %v182_v49 }
 0x241   :  { %661 = vmatprep.mubr.msk.f32.mxu1 %vm794_vm0, %v795_v7 }
 0x313   :  { %v262_v57 = vpop.f32.mrb[0].mxu1 }
 0x314   :  { %v263_v58 = vadd.f32 %v585_v56, %v262_v57  ;;  %v658_v59 = vpop.f32.mrb[1].mxu1 }
 0x316   :  { %743 = vtanh.f32 %v263_v58 }
 0x320   :  { %v744_v63 = vpop.eup %743 }
 0x321   :  { %660 = vmatpush3.msk.msra.mxu1 %vm283_vm3, %v744_v63 }
 0x322   :  { %662 = vmatmul.mubr.msk.f32.vlgmr.msra.gmra.mrb[2].mxu1 %vm276_vm2, %v588_v54  ;;  %712 = vmatprep.subr.bf16.mxu1 %v793_v3 }
 0x323   :  { %714 = vmatpush3.bf16.msra.mxu1 %v713_v62  ;;  %672 = vmatprep.mubr.msk.f32.mxu1 %vm794_vm0, %v795_v7  ;;  %v279_v7 = vpop.xlane.xlu1 %278  ;;  %vm456_vm0 = vcmask 523264  }
 0x324   :  { %715 = vmatprep.subr.bf16.mxu1 %v793_v3  ;;  %v357_v14 = vmax.f32 %v279_v7, 1.0 }
 0x326   :  { %745 = vrcp.f32 %v357_v14 }
 0x327   :  { %717 = vmatpush3.bf16.msra.mxu1 %v716_v2  ;;  %v543_v32 = vpop.permute.xlu1 %542 }
 0x328   :  { %v545_v34 = vmul.f32 %v543_v32, %v540_v31 }
 0x32a   :  { %v547_v37 = vsel %vm546_vm4, %v545_v34, 0.0 }
 0x330   :  { %v746_v15 = vpop.eup %745 }
 0x3f5   :  { %v353_v16 = vpop.f32.mrb[2].mxu1 }
 0x3f6   :  { %v359_v17 = vmul.f32 %v746_v15, %v353_v16  ;;  %v663_v18 = vpop.f32.mrb[3].mxu1 }
 0x3f8   :  { %673 = vmatmul.mubr.msk.f32.vlgmr.msra.gmra.mrb[4].mxu1 %vm192_vm14, %v359_v17 }
 0x4cb   :  { %v438_v24 = vpop.f32.mrb[4].mxu1 }
 0x4cc   :  { %v439_v25 = vadd.f32 %v591_v23, %v438_v24  ;;  %v674_v3 = vpop.f32.mrb[5].mxu1 }
 0x4ce   :  { %v442_v26 = vmax.f32 %v439_v25, 0.0 }
 0x4d0   :  { %692 = vmatmul.mubr.msk.f32.vlgmr.msra.gmra.mrb[2].mxu0 %vm456_vm0, %v442_v26 }
 0x5a3   :  { %v526_v28 = vpop.f32.mrb[2].mxu0 }
 0x5a4   :  { %v527_v29 = vadd.f32 %v593_v27, %v526_v28  ;;  %v693_v30 = vpop.f32.mrb[3].mxu0 }
 0x5a6   :  { %v530_v33 = vmax.f32 %v527_v29, 0.0 }
 0x5a8   :  { %v536_v35 = vmul.f32 %v595_v22, %v530_v33 }
 0x5aa   :  { %v537_v36 = vsel %vm192_vm14, %v536_v35, 0.0 }
 0x5ab   :  { %538 = vadd.xlane.f32.xlu0 %v537_v36 }
 0x5af   :  { %548 = vadd.xlane.f32.xlu0 %v547_v37 }
 0x638   :  { %v539_v39 = vpop.xlane.xlu0 %538 }
 0x63c   :  { %v549_v40 = vpop.xlane.xlu0 %548 }
 0x63d   :  { %v550_v41 = vadd.f32 %v549_v40, %v539_v39 }
 0x63f   :  { %v551_v42 = vadd.f32 %v595_v22, %v550_v41 }
 0x641   :  { %v552_v43 = vand.u32 2147483647, %v551_v42  ;;  %vm556_vm5 = vcmp.ge.f32.partialorder %v551_v42, 0.0 }
 0x643   :  { %v553_v44 = vsub.f32 0.0, %v552_v43 }
 0x645   :  { %v554_v45 = vmul.f32 1.442695, %v553_v44 }
 0x647   :  { %747 = vpow2.f32 %v554_v45 }
 0x651   :  { %v748_v46 = vpop.eup %747 }
 0x652   :  { %v557_v47 = vadd.f32 1.0, %v748_v46 }
 0x654   :  { %749 = vrcp.f32 %v557_v47 }
 0x65e   :  { %v750_v48 = vpop.eup %749 }
 0x65f   :  { %v560_v49 = vmul.f32 %v750_v48, %v748_v46 }
 0x661   :  { %v561_v50 = vsel %vm556_vm5, %v750_v48, %v560_v49 }
 0x662   :  { %564 = vperm.xlu0 %740, %v561_v50  }
 0x6e1   :  { %v565_v51 = vpop.permute.xlu0 %564 }
 0x6e2   :  { %567 = vst [vmem:[%s891_s3] sm:$0xff] %v565_v51 }
 0x6e3   :  { %572 = vsyncpa [#allocation3], 1 }
 0x6e4   :  { %573 = vsyncpa [#allocation4], 1 }

</bundles_post_ra>
